<compile_context>
chip_gen: v7x
topology: tpu7x:2x2x1
jax: 0.10.0
libtpu: 0.0.40
codegen_flags: <defaults>
</compile_context>

<pallas_src>
import functools

import jax
import jax.numpy as jnp
from jax.experimental import pallas as pl
from jax.experimental.pallas import tpu as pltpu


# ----------------------------- Pallas kernel ------------------------------ #
def _rope2d_kernel(x_ref, cos_ref, sin_e_ref, sin_o_ref, o_ref, *,
                   tp, tb, slice_tables):
    """x_ref / o_ref: (tb, tp, F).  Table refs: (tp, F) tiles, or the full resident
    (P_pad, F) tables when slice_tables=True (sliced at row p * tp)."""
    if slice_tables:
        r0 = pl.multiple_of(pl.program_id(0) * tp, tp)
        cos = cos_ref[pl.ds(r0, tp), :].astype(jnp.float32)
        sin_e = sin_e_ref[pl.ds(r0, tp), :].astype(jnp.float32)
        sin_o = sin_o_ref[pl.ds(r0, tp), :].astype(jnp.float32)
    else:
        cos = cos_ref[...].astype(jnp.float32)
        sin_e = sin_e_ref[...].astype(jnp.float32)
        sin_o = sin_o_ref[...].astype(jnp.float32)
    F = cos.shape[-1]
    # Small static unroll over the batch tile: keeps the rolls 2-D and reuses the
    # (tp, F) tables across the tile without an explicit broadcast op.
    for i in range(tb):
        x = x_ref[i].astype(jnp.float32)                     # (tp, F)
        # Constant +/-1 neighbor rotations along the lane axis (XLU slot; hidden under
        # the HBM DMA).  Wrap-around lanes hit exact zeros in the signed sin tables.
        x_next = pltpu.roll(x, shift=F - 1, axis=1)          # x_next[l] = x[l + 1]
        x_prev = pltpu.roll(x, shift=1, axis=1)              # x_prev[l] = x[l - 1]
        o_ref[i] = (x * cos + x_next * sin_e + x_prev * sin_o).astype(o_ref.dtype)


# -------------------------- angle / table construction --------------------- #
def _rope2d_pair_angles(dim, patch_resolution, theta=10000.0, base_size=14.0,
                        step=1, bias=0.0):
    """Per-pair rotation angles, shape (H*W, dim//2); pairs alternate x / y angles.
    Mirrors RotaryEmbeddingFast2D.compute_position_embedding."""
    H, W = patch_resolution
    end = H * W
    pos = jnp.arange(end)
    x_pos = (bias + (pos % W) * step).astype(jnp.float32) * (base_size / W)
    y_pos = (bias + (pos // W) * step).astype(jnp.float32) * (base_size / H)
    freqs = 1.0 / theta ** (jnp.arange(0, dim, 4)[: dim // 4].astype(jnp.float32) / dim)
    x_ang = jnp.outer(x_pos, freqs)                            # (end, dim//4)
    y_ang = jnp.outer(y_pos, freqs)                            # (end, dim//4)
    return jnp.stack([x_ang, y_ang], axis=-1).reshape(end, dim // 2)


def make_rope2d_tables(dim, patch_resolution, num_heads, theta=10000.0, base_size=14.0,
                       table_dtype=jnp.float32):
    """cos / signed-sin tables of shape (H*W, num_heads*dim).

    Shape/hyperparameter-only constants: compute once outside the step function and
    reuse.  table_dtype=jnp.bfloat16 halves table bandwidth / VMEM (error ~1e-3)."""
    ang = _rope2d_pair_angles(dim, patch_resolution, theta=theta, base_size=base_size)
    P = ang.shape[0]
    cos_p, sin_p = jnp.cos(ang), jnp.sin(ang)                  # (P, dim//2)
    zeros = jnp.zeros_like(sin_p)
    cos = jnp.repeat(cos_p, 2, axis=-1)                                   # c[2j]=c[2j+1]=cos_j
    sin_e = jnp.stack([-sin_p, zeros], axis=-1).reshape(P, dim)           # -sin_j at even lanes
    sin_o = jnp.stack([zeros, sin_p], axis=-1).reshape(P, dim)            # +sin_j at odd lanes
    if num_heads > 1:
        # Heads fold into the lane axis; replicate along lanes so the body stays a
        # pure FMA.  With resident tables this is fetched from HBM once per call.
        cos = jnp.tile(cos, (1, num_heads))
        sin_e = jnp.tile(sin_e, (1, num_heads))
        sin_o = jnp.tile(sin_o, (1, num_heads))
    return (cos.astype(table_dtype), sin_e.astype(table_dtype), sin_o.astype(table_dtype))


# ------------------------------ tile selection ------------------------------ #
def _sublane_multiple(itemsize):
    # rows per packed sublane tile: f32 -> 8, bf16 -> 16, int8/fp8 -> 32
    return 8 * max(1, 4 // max(int(itemsize), 1))


def _vmem_capacity_bytes():
    try:
        return int(pltpu.get_tpu_info().vmem_capacity_bytes)
    except Exception:
        return 64 << 20           # conservative (v7x per-TC) fallback


def _choose_tiles(B, P, F, x_bytes, t_bytes, tables_resident, budget, max_tb=16):
    """Pick (tb, tp) so the per-step blocks (double-buffered x in/out, plus tables)
    fit `budget`.  tp is a multiple of the packed sublane size or the full extent P."""
    sub = _sublane_multiple(x_bytes)
    table_fixed = 3 * P * F * t_bytes if tables_resident else 0
    x_per_row = 2 * 2 * F * x_bytes                        # in + out, double-buffered
    t_per_row = 0 if tables_resident else 2 * 3 * F * t_bytes

    def step_bytes(tb, tp):
        return tb * tp * x_per_row + tp * t_per_row + table_fixed

    if P <= sub or step_bytes(1, P) <= budget:
        tp = P                                             # full extent: legal for any P
    else:
        best_any, best_div = 0, 0
        for cand in range(sub, (P // sub) * sub + 1, sub):
            if step_bytes(1, cand) <= budget:
                best_any = cand
                if P % cand == 0:
                    best_div = cand
        # Prefer an exact divisor (no masked partial block) unless it is much smaller.
        tp = best_div if best_div >= max(best_any // 2, sub) else best_any
        if tp == 0:
            tp = sub

    tb = 1
    for d in range(min(B, max_tb), 0, -1):
        if B % d == 0 and step_bytes(d, tp) <= budget:
            tb = d
            break
    return tb, tp


# --------------------------------- wrapper ---------------------------------- #
def rotary_embedding_fast_2d(x, patch_resolution, theta=10000.0, base_size=14.0,
                             tables=None, table_dtype=None,
                             block_p=None, block_b=None, donate_x=False):
    """x: [batch, num_patches, num_heads, dim] -> same shape & dtype (2-D RoPE)."""
    B, P, Hh, D = x.shape
    H, W = patch_resolution
    assert H * W == P, "patch_resolution must match num_patches"
    assert D % 4 == 0, "dim must be a multiple of 4 (interleaved x/y pairs)"

    if table_dtype is None:
        table_dtype = jnp.bfloat16 if x.dtype == jnp.bfloat16 else jnp.float32
    if tables is None:
        tables = make_rope2d_tables(D, (H, W), Hh, theta=theta, base_size=base_size,
                                    table_dtype=table_dtype)
    cos_t, sin_e_t, sin_o_t = tables

    F = Hh * D
    x_flat = x.reshape(B, P, F)            # heads fold into the lane-dense last axis
    x_bytes = x.dtype.itemsize
    t_bytes = jnp.dtype(cos_t.dtype).itemsize

    # --- VMEM budgeting (generation-aware, capped for v7x's 64 MiB per-TC VMEM) ---
    cap = _vmem_capacity_bytes()
    budget = max(min(cap // 4, 24 << 20), 4 << 20)
    tables_resident = (3 * P * F * t_bytes) <= min(budget // 2, 8 << 20)

    tb, tp = _choose_tiles(B, P, F, x_bytes, t_bytes, tables_resident, budget)
    if block_p is not None:
        assert block_p == P or block_p % 8 == 0, "block_p must be P or a multiple of 8"
        tp = min(block_p, P)
    if block_b is not None:
        assert B % block_b == 0, "block_b must divide batch"
        tb = block_b

    grid_p = pl.cdiv(P, tp)
    grid_b = B // tb
    p_rows = grid_p * tp                   # padded table extent (tables are tiny)

    def _fit_rows(t):
        r = t.shape[0]
        if r < p_rows:
            return jnp.pad(t, ((0, p_rows - r), (0, 0)))
        return t[:p_rows] if r > p_rows else t
    cos_t, sin_e_t, sin_o_t = map(_fit_rows, (cos_t, sin_e_t, sin_o_t))

    if tables_resident:
        # Constant index_map: fetched from HBM once per call, resident for all steps.
        table_spec = pl.BlockSpec((p_rows, F), lambda p, b: (0, 0))
    else:
        table_spec = pl.BlockSpec((tp, F), lambda p, b: (p, 0))

    slice_tables = tables_resident and grid_p > 1
    kernel = functools.partial(_rope2d_kernel, tp=tp, tb=tb, slice_tables=slice_tables)

    step_b = (4 * tb * tp * F * x_bytes
              + (2 * 3 * p_rows * F * t_bytes if tables_resident
                 else 2 * 3 * tp * F * t_bytes))
    vmem_limit = int(min(max(32 << 20, 2 * step_b), (cap * 3) // 4))

    out = pl.pallas_call(
        kernel,
        out_shape=jax.ShapeDtypeStruct((B, P, F), x.dtype),
        grid_spec=pltpu.PrefetchScalarGridSpec(
            num_scalar_prefetch=0,
            grid=(grid_p, grid_b),                                # batch innermost
            in_specs=[
                pl.BlockSpec((tb, tp, F), lambda p, b: (b, p, 0)),   # x
                table_spec,                                          # cos
                table_spec,                                          # -sin @ even lanes
                table_spec,                                          # +sin @ odd lanes
            ],
            out_specs=pl.BlockSpec((tb, tp, F), lambda p, b: (b, p, 0)),
        ),
        compiler_params=pltpu.CompilerParams(
            dimension_semantics=("parallel", "parallel"),
            vmem_limit_bytes=vmem_limit),
        input_output_aliases=({0: 0} if donate_x else {}),
    )(x_flat, cos_t, sin_e_t, sin_o_t)

    return out.reshape(B, P, Hh, D)


# --------------------------- pure-JAX reference ----------------------------- #
def rope2d_reference(x, patch_resolution, theta=10000.0, base_size=14.0):
    B, P, Hh, D = x.shape
    ang = _rope2d_pair_angles(D, patch_resolution, theta=theta, base_size=base_size)
    c = jnp.cos(ang)[None, :, None, :]   # (1, P, 1, D//2)
    s = jnp.sin(ang)[None, :, None, :]
    xf = x.astype(jnp.float32).reshape(B, P, Hh, D // 2, 2)
    xr, xi = xf[..., 0], xf[..., 1]
    outr = xr * c - xi * s
    outi = xr * s + xi * c
    return jnp.stack([outr, outi], axis=-1).reshape(B, P, Hh, D).astype(x.dtype)


if __name__ == "__main__":
    key = jax.random.PRNGKey(0)
    k1, k2, k3 = jax.random.split(key, 3)

    def check(name, x, hw, tol, **kw):
        out = jax.block_until_ready(rotary_embedding_fast_2d(x, hw, **kw))
        ref = rope2d_reference(x, hw)
        assert out.shape == x.shape and out.dtype == x.dtype
        err = float(jnp.max(jnp.abs(out.astype(jnp.float32) - ref.astype(jnp.float32))))
        if err > tol:
            raise AssertionError(f"{name}: max abs err = {err} > {tol}")

    # 1) Small f32 case: P = 64, F = num_heads*dim = 128 (lane-dense).
    x1 = jax.random.normal(k1, (2, 8 * 8, 4, 32), dtype=jnp.float32)
    check("f32/P64/F128", x1, (8, 8), 1e-5)

    # 2) Realistic ViG patch grid: P = 14*14 = 196 (not a multiple of 8), F = 256 (>128,
    #    cross-vreg rolls), bf16 activations -> bf16 tables.
    x2 = jax.random.normal(k2, (2, 14 * 14, 2, 128), dtype=jnp.bfloat16)
    check("bf16/P196/F256", x2, (14, 14), 1e-1)

    # 3) Forced small tiles: multi-block grid + resident-table pl.ds slicing path.
    x3 = jax.random.normal(k3, (2, 8 * 8, 4, 32), dtype=jnp.float32)
    check("f32/tiled/P64", x3, (8, 8), 1e-5, block_p=16, block_b=1)

    print("KERNEL_OK")
</pallas_src>

<mosaic_0001>
module attributes {stable_mosaic.version = 11 : i64} {
  func.func @_rope2d_kernel(%arg0: i32, %arg1: i32, %arg2: memref<2x64x128xf32, #tpu.memory_space<vmem>>, %arg3: memref<64x128xf32, #tpu.memory_space<vmem>>, %arg4: memref<64x128xf32, #tpu.memory_space<vmem>>, %arg5: memref<64x128xf32, #tpu.memory_space<vmem>>, %arg6: memref<2x64x128xf32, #tpu.memory_space<vmem>>) attributes {dimension_semantics = [#tpu.dimension_semantics<parallel>, #tpu.dimension_semantics<parallel>], iteration_bounds = array<i64: 1, 1>, scalar_prefetch = 0 : i64, scratch_operands = 0 : i64, tpu.core_type = #tpu.core_type<tc>, window_params = [{transform_indices = @transform_0, window_bounds = array<i64: 2, 64, 128>}, {pipeline_mode = #tpu.pipeline_mode<synchronous>, transform_indices = @transform_1, window_bounds = array<i64: 64, 128>}, {pipeline_mode = #tpu.pipeline_mode<synchronous>, transform_indices = @transform_2, window_bounds = array<i64: 64, 128>}, {pipeline_mode = #tpu.pipeline_mode<synchronous>, transform_indices = @transform_3, window_bounds = array<i64: 64, 128>}, {transform_indices = @transform_4, window_bounds = array<i64: 2, 64, 128>}]} {
    %c0 = arith.constant 0 : index
    %c0_0 = arith.constant 0 : index
    %0 = vector.load %arg3[%c0, %c0_0] : memref<64x128xf32, #tpu.memory_space<vmem>>, vector<64x128xf32>
    %c0_1 = arith.constant 0 : index
    %c0_2 = arith.constant 0 : index
    %1 = vector.load %arg4[%c0_1, %c0_2] : memref<64x128xf32, #tpu.memory_space<vmem>>, vector<64x128xf32>
    %c0_3 = arith.constant 0 : index
    %c0_4 = arith.constant 0 : index
    %2 = vector.load %arg5[%c0_3, %c0_4] : memref<64x128xf32, #tpu.memory_space<vmem>>, vector<64x128xf32>
    %c0_5 = arith.constant 0 : index
    %c0_6 = arith.constant 0 : index
    %c0_7 = arith.constant 0 : index
    %3 = vector.load %arg2[%c0_5, %c0_6, %c0_7] : memref<2x64x128xf32, #tpu.memory_space<vmem>>, vector<1x64x128xf32>
    %4 = vector.shape_cast %3 : vector<1x64x128xf32> to vector<64x128xf32>
    %c127_i32 = arith.constant 127 : i32
    %5 = tpu.dynamic_rotate %4 by %c127_i32 dim 1 : vector<64x128xf32>, i32 -> vector<64x128xf32>
    %c1_i32 = arith.constant 1 : i32
    %6 = tpu.dynamic_rotate %4 by %c1_i32 dim 1 : vector<64x128xf32>, i32 -> vector<64x128xf32>
    %7 = arith.mulf %4, %0 : vector<64x128xf32>
    %8 = arith.mulf %5, %1 : vector<64x128xf32>
    %9 = arith.addf %7, %8 : vector<64x128xf32>
    %10 = arith.mulf %6, %2 : vector<64x128xf32>
    %11 = arith.addf %9, %10 : vector<64x128xf32>
    %c0_8 = arith.constant 0 : index
    %c0_9 = arith.constant 0 : index
    %c0_10 = arith.constant 0 : index
    %12 = vector.load %arg6[%c0_8, %c0_9, %c0_10] : memref<2x64x128xf32, #tpu.memory_space<vmem>>, vector<1x64x128xf32>
    %13 = vector.shape_cast %12 : vector<1x64x128xf32> to vector<64x128xf32>
    %14 = vector.shape_cast %11 : vector<64x128xf32> to vector<1x64x128xf32>
    tpu.vector_store %arg6[%c0_8, %c0_9, %c0_10], %14 {strides = array<i32>} : memref<2x64x128xf32, #tpu.memory_space<vmem>>, vector<1x64x128xf32>,
    %c1 = arith.constant 1 : index
    %c0_11 = arith.constant 0 : index
    %c0_12 = arith.constant 0 : index
    %15 = vector.load %arg2[%c1, %c0_11, %c0_12] : memref<2x64x128xf32, #tpu.memory_space<vmem>>, vector<1x64x128xf32>
    %16 = vector.shape_cast %15 : vector<1x64x128xf32> to vector<64x128xf32>
    %c127_i32_13 = arith.constant 127 : i32
    %17 = tpu.dynamic_rotate %16 by %c127_i32_13 dim 1 : vector<64x128xf32>, i32 -> vector<64x128xf32>
    %c1_i32_14 = arith.constant 1 : i32
    %18 = tpu.dynamic_rotate %16 by %c1_i32_14 dim 1 : vector<64x128xf32>, i32 -> vector<64x128xf32>
    %19 = arith.mulf %16, %0 : vector<64x128xf32>
    %20 = arith.mulf %17, %1 : vector<64x128xf32>
    %21 = arith.addf %19, %20 : vector<64x128xf32>
    %22 = arith.mulf %18, %2 : vector<64x128xf32>
    %23 = arith.addf %21, %22 : vector<64x128xf32>
    %c1_15 = arith.constant 1 : index
    %c0_16 = arith.constant 0 : index
    %c0_17 = arith.constant 0 : index
    %24 = vector.load %arg6[%c1_15, %c0_16, %c0_17] : memref<2x64x128xf32, #tpu.memory_space<vmem>>, vector<1x64x128xf32>
    %25 = vector.shape_cast %24 : vector<1x64x128xf32> to vector<64x128xf32>
    %26 = vector.shape_cast %23 : vector<64x128xf32> to vector<1x64x128xf32>
    tpu.vector_store %arg6[%c1_15, %c0_16, %c0_17], %26 {strides = array<i32>} : memref<2x64x128xf32, #tpu.memory_space<vmem>>, vector<1x64x128xf32>,
    return
  }
  func.func @transform_0(%arg0: i32, %arg1: i32) -> (i32, i32, i32) {
    %c0_i32 = arith.constant 0 : i32
    %c0_i32_0 = arith.constant 0 : i32
    return %arg1, %arg0, %c0_i32 : i32, i32, i32
  }
  func.func @transform_1(%arg0: i32, %arg1: i32) -> (i32, i32) {
    %c0_i32 = arith.constant 0 : i32
    %c0_i32_0 = arith.constant 0 : i32
    %c0_i32_1 = arith.constant 0 : i32
    return %c0_i32, %c0_i32_0 : i32, i32
  }
  func.func @transform_2(%arg0: i32, %arg1: i32) -> (i32, i32) {
    %c0_i32 = arith.constant 0 : i32
    %c0_i32_0 = arith.constant 0 : i32
    %c0_i32_1 = arith.constant 0 : i32
    return %c0_i32, %c0_i32_0 : i32, i32
  }
  func.func @transform_3(%arg0: i32, %arg1: i32) -> (i32, i32) {
    %c0_i32 = arith.constant 0 : i32
    %c0_i32_0 = arith.constant 0 : i32
    %c0_i32_1 = arith.constant 0 : i32
    return %c0_i32, %c0_i32_0 : i32, i32
  }
  func.func @transform_4(%arg0: i32, %arg1: i32) -> (i32, i32, i32) {
    %c0_i32 = arith.constant 0 : i32
    %c0_i32_0 = arith.constant 0 : i32
    return %arg1, %arg0, %c0_i32 : i32, i32, i32
  }
}

</mosaic_0001>

<bundles_post_ra>
// kernel: tpu_custom_call.1
= control target key start
LH: loop header
LB: loop body
LE: loop exit
PB: predicated region body
PF: predicated region fallthrough
CT: control target
= control target key end

     0   :  { %9 = vsyncpa [#allocation3], 0  ;;  %s750_s0 = inlined_call_operand.hbm [shape: f32[2,64,128], index: 0, kind: input, shape index: {}]   ;;  %s751_s1 = inlined_call_operand.hbm [shape: f32[64,128], index: 1, kind: input, shape index: {}]   ;;  %s752_s2 = inlined_call_operand.hbm [shape: f32[64,128], index: 2, kind: input, shape index: {}]   ;;  %s753_s3 = inlined_call_operand.hbm [shape: f32[64,128], index: 3, kind: input, shape index: {}]   ;;  %s754_s4 = inlined_call_operand.hbm [shape: f32[2,64,128], index: 4, kind: output, shape index: {}]  }
   0x1   :  { %10 = vsyncpa [#allocation6], 0 }
   0x2   :  { %11 = vsyncpa [#allocation9], 0 }
   0x3   :  { %12 = vsyncpa [#allocation4], 0  ;;  %s421_s15 = smov [#allocation5]   ;;  %s422_s17 = smov [#allocation2]  }
   0x4   :  { %s30_s16 = sshll.u32 %s421_s15, 4  ;;  %s18_s18 = sshll.u32 %s422_s17, 4  ;;  %s31_s16 = int_to_ptr.vmem [resolvable:$true] %s30_s16  ;;  %s455_s18 = int_to_ptr.vmem [resolvable:$true] %s18_s18 }
   0x5   :  { %s303_s21 = scalar_lea.hbm %s751_s1, 1024 }
   0x6   :  { %p304_p0 = scmp.ne.s32.totalorder %s751_s1, %s303_s21  ;;  %p307_p1 = scmp.lt.u32.totalorder %s303_s21, %s751_s1 }
   0x8   :  { %p309_p2 = pnand %p307_p1, %p304_p0 }
   0xa   :  { %312 = shalt.err (!%p309_p2)
}
   0xb   :  { %s313_s26 = scalar_lea.vmem %s31_s16, 1024  ;;  %p318_p4 = scmp.lt.s32.totalorder %s31_s16, %s31_s16 }
   0xc   :  { %p314_p3 = scmp.ne.s32.totalorder %s31_s16, %s313_s26  ;;  %p319_p5 = scmp.lt.s32.totalorder %s313_s26, %s313_s26 }
   0xe   :  { %p320_p6 = por %p319_p5, %p318_p4 }
  0x10   :  { %p321_p7 = pnand %p320_p6, %p314_p3 }
  0x12   :  { %324 = shalt.err (!%p321_p7)
}
  0x13   :  { %s423_s27 = smov 128   ;;  %s424_s28 = smov 8  }
  0x14   :  { %36 = dma.hbm_to_vmem [thread:$0]  %s751_s1, 1024, %s31_s16, [#allocation6], %s423_s27, %s423_s27, %s424_s28  }
  0x15   :  { %s325_s7 = scalar_lea.hbm %s750_s0, 2048 }
  0x16   :  { %p326_p8 = scmp.ne.s32.totalorder %s750_s0, %s325_s7  ;;  %p329_p9 = scmp.lt.u32.totalorder %s325_s7, %s750_s0 }
  0x18   :  { %p331_p10 = pnand %p329_p9, %p326_p8 }
  0x1a   :  { %334 = shalt.err (!%p331_p10)
}
  0x1b   :  { %s335_s12 = scalar_lea.vmem %s455_s18, 2048  ;;  %p340_p12 = scmp.lt.s32.totalorder %s455_s18, %s455_s18 }
  0x1c   :  { %p336_p11 = scmp.ne.s32.totalorder %s455_s18, %s335_s12  ;;  %p341_p13 = scmp.lt.s32.totalorder %s335_s12, %s335_s12 }
  0x1e   :  { %p342_p0 = por %p341_p13, %p340_p12 }
  0x20   :  { %p343_p1 = pnand %p342_p0, %p336_p11 }
  0x22   :  { %346 = shalt.err (!%p343_p1)
}
  0x23   :  { %24 = dma.hbm_to_vmem [thread:$0]  %s750_s0, 2048, %s455_s18, [#allocation3], %s423_s27, %s423_s27, %s424_s28  }
  0x24   :  { %s425_s14 = smov [#allocation7]   ;;  %s426_s16 = smov [#allocation8]  }
  0x25   :  { %s42_s15 = sshll.u32 %s425_s14, 4  ;;  %s54_s17 = sshll.u32 %s426_s16, 4  ;;  %s43_s15 = int_to_ptr.vmem [resolvable:$true] %s42_s15  ;;  %s492_s17 = int_to_ptr.vmem [resolvable:$true] %s54_s17 }
  0x26   :  { %s347_s21 = scalar_lea.hbm %s752_s2, 1024 }
  0x27   :  { %p348_p2 = scmp.ne.s32.totalorder %s752_s2, %s347_s21  ;;  %p351_p3 = scmp.lt.u32.totalorder %s347_s21, %s752_s2 }
  0x29   :  { %p353_p4 = pnand %p351_p3, %p348_p2 }
  0x2b   :  { %356 = shalt.err (!%p353_p4)
}
  0x2c   :  { %s357_s0 = scalar_lea.vmem %s43_s15, 1024  ;;  %p362_p6 = scmp.lt.s32.totalorder %s43_s15, %s43_s15 }
  0x2d   :  { %p358_p5 = scmp.ne.s32.totalorder %s43_s15, %s357_s0  ;;  %p363_p7 = scmp.lt.s32.totalorder %s357_s0, %s357_s0 }
  0x2f   :  { %p364_p8 = por %p363_p7, %p362_p6 }
  0x31   :  { %p365_p9 = pnand %p364_p8, %p358_p5 }
  0x33   :  { %368 = shalt.err (!%p365_p9)
}
  0x34   :  { %48 = dma.hbm_to_vmem [thread:$0]  %s752_s2, 1024, %s43_s15, [#allocation6], %s423_s27, %s423_s27, %s424_s28  }
  0x35   :  { %s369_s5 = scalar_lea.hbm %s753_s3, 1024 }
  0x36   :  { %p370_p10 = scmp.ne.s32.totalorder %s753_s3, %s369_s5  ;;  %p373_p11 = scmp.lt.u32.totalorder %s369_s5, %s753_s3 }
  0x38   :  { %p375_p12 = pnand %p373_p11, %p370_p10 }
  0x3a   :  { %378 = shalt.err (!%p375_p12)
}
  0x3b   :  { %s379_s10 = scalar_lea.vmem %s492_s17, 1024  ;;  %p384_p0 = scmp.lt.s32.totalorder %s492_s17, %s492_s17 }
  0x3c   :  { %p380_p13 = scmp.ne.s32.totalorder %s492_s17, %s379_s10  ;;  %p385_p1 = scmp.lt.s32.totalorder %s379_s10, %s379_s10 }
  0x3e   :  { %p386_p2 = por %p385_p1, %p384_p0 }
  0x40   :  { %p387_p3 = pnand %p386_p2, %p380_p13 }
  0x42   :  { %390 = shalt.err (!%p387_p3)
}
  0x43   :  { %60 = dma.hbm_to_vmem [thread:$0]  %s753_s3, 1024, %s492_s17, [#allocation9], %s423_s27, %s423_s27, %s424_s28  }
  0x44   :  { %413 = dma.done.wait [#allocation3], 2048  }
  0x45   :  { %414 = vsyncadd [#allocation3], 4294965248 }
  0x46   :  { %415 = dma.done.wait [#allocation6], 2048  }
  0x47   :  { %416 = vsyncadd [#allocation6], 4294965248 }
  0x48   :  { %417 = dma.done.wait [#allocation9], 1024  }
  0x49   :  { %418 = vsyncadd [#allocation9], 4294966272  ;;  %v529_v0 = vld [vmem:[#allocation2 + $0x10] sm:$0xff]  ;;  %v531_v1 = vld [vmem:[#allocation2] sm:$0xff]  ;;  %s427_s12 = smov 127   ;;  %s428_s3 = smov 1  }
  0x4a   :  { %109 = vrot.lane.b32.xlu1 %v529_v0, %s427_s12  ;;  %105 = vrot.lane.b32.xlu0 %v531_v1, %s427_s12  ;;  %v535_v2 = vld [vmem:[#allocation2 + $0x18] sm:$0xff]  ;;  %v537_v3 = vld [vmem:[#allocation2 + $0x8] sm:$0xff]  ;;  %v543_v5 = vld [vmem:[#allocation2 + $0x20] sm:$0xff]  ;;  %s429_s1 = smov [#allocation10]  }
  0x4b   :  { %v541_v4 = vld [vmem:[#allocation2 + $0x28] sm:$0xff]  ;;  %v547_v6 = vld [vmem:[#allocation2 + $0x38] sm:$0xff]  ;;  %v549_v7 = vld [vmem:[#allocation2 + $0x30] sm:$0xff]  ;;  %s280_s13 = sshll.u32 %s429_s1, 4  ;;  %s281_s13 = int_to_ptr.vmem [resolvable:$true] %s280_s13 }
  0x4c   :  { %v553_v8 = vld [vmem:[#allocation2 + $0x48] sm:$0xff]  ;;  %v555_v9 = vld [vmem:[#allocation2 + $0x40] sm:$0xff]  ;;  %v559_v10 = vld [vmem:[#allocation2 + $0x58] sm:$0xff]  ;;  %s391_s14 = scalar_lea.vmem %s281_s13, 2048  ;;  %p396_p5 = scmp.lt.s32.totalorder %s281_s13, %s281_s13 }
  0x4d   :  { %v561_v11 = vld [vmem:[#allocation2 + $0x50] sm:$0xff]  ;;  %v565_v12 = vld [vmem:[#allocation2 + $0x68] sm:$0xff]  ;;  %v567_v13 = vld [vmem:[#allocation2 + $0x60] sm:$0xff]  ;;  %p392_p4 = scmp.ne.s32.totalorder %s281_s13, %s391_s14  ;;  %p397_p6 = scmp.lt.s32.totalorder %s391_s14, %s391_s14 }
  0x4e   :  { %111 = vrot.lane.b32.xlu1 %v535_v2, %s427_s12  ;;  %107 = vrot.lane.b32.xlu0 %v537_v3, %s427_s12  ;;  %v571_v14 = vld [vmem:[#allocation2 + $0x78] sm:$0xff]  ;;  %v573_v15 = vld [vmem:[#allocation2 + $0x70] sm:$0xff]  ;;  %v609_v30 = vld [vmem:[#allocation5] sm:$0xff] }
  0x4f   :  { %v611_v31 = vld [vmem:[#allocation7] sm:$0xff]  ;;  %v613_v32 = vld [vmem:[#allocation5 + $0x8] sm:$0xff]  ;;  %v137_v34 = vmul.f32 %v531_v1, %v609_v30  ;;  %v624_v38 = vld [vmem:[#allocation5 + $0x10] sm:$0xff]  ;;  %p398_p7 = por %p397_p6, %p396_p5 }
  0x50   :  { %v615_v33 = vld [vmem:[#allocation7 + $0x8] sm:$0xff]  ;;  %v626_v39 = vld [vmem:[#allocation5 + $0x18] sm:$0xff]  ;;  %v138_v40 = vmul.f32 %v537_v3, %v613_v32  ;;  %v630_v41 = vld [vmem:[#allocation7 + $0x10] sm:$0xff]  ;;  %v139_v46 = vmul.f32 %v529_v0, %v624_v38 }
  0x51   :  { %v633_v43 = vld [vmem:[#allocation7 + $0x18] sm:$0xff]  ;;  %v635_v44 = vld [vmem:[#allocation8 + $0x8] sm:$0xff]  ;;  %v637_v45 = vld [vmem:[#allocation8] sm:$0xff]  ;;  %v140_v47 = vmul.f32 %v535_v2, %v626_v39  ;;  %p399_p8 = pnand %p398_p7, %p392_p4 }
  0x52   :  { %115 = vrot.lane.b32.xlu1 %v541_v4, %s427_s12  ;;  %113 = vrot.lane.b32.xlu0 %v543_v5, %s427_s12  ;;  %v643_v48 = vld [vmem:[#allocation5 + $0x28] sm:$0xff]  ;;  %v646_v53 = vld [vmem:[#allocation5 + $0x20] sm:$0xff]  ;;  %v655_v60 = vld [vmem:[#allocation8 + $0x18] sm:$0xff] }
  0x53   :  { %v649_v56 = vld [vmem:[#allocation7 + $0x28] sm:$0xff]  ;;  %v651_v57 = vld [vmem:[#allocation7 + $0x20] sm:$0xff]  ;;  %v657_v61 = vld [vmem:[#allocation8 + $0x10] sm:$0xff] }
  0x56   :  { %119 = vrot.lane.b32.xlu1 %v547_v6, %s427_s12  ;;  %117 = vrot.lane.b32.xlu0 %v549_v7, %s427_s12 }
  0x5a   :  { %196 = vrot.lane.b32.xlu1 %v553_v8, %s427_s12  ;;  %194 = vrot.lane.b32.xlu0 %v555_v9, %s427_s12 }
  0x5e   :  { %200 = vrot.lane.b32.xlu1 %v559_v10, %s427_s12  ;;  %198 = vrot.lane.b32.xlu0 %v561_v11, %s427_s12 }
  0x62   :  { %204 = vrot.lane.b32.xlu1 %v565_v12, %s427_s12  ;;  %202 = vrot.lane.b32.xlu0 %v567_v13, %s427_s12 }
  0x66   :  { %208 = vrot.lane.b32.xlu1 %v571_v14, %s427_s12  ;;  %206 = vrot.lane.b32.xlu0 %v573_v15, %s427_s12 }
  0x6a   :  { %123 = vrot.lane.b32.xlu1 %v537_v3, %s428_s3  ;;  %121 = vrot.lane.b32.xlu0 %v531_v1, %s428_s3  ;;  %v141_v1 = vmul.f32 %v543_v5, %v646_v53 }
  0x6e   :  { %127 = vrot.lane.b32.xlu1 %v535_v2, %s428_s3  ;;  %125 = vrot.lane.b32.xlu0 %v529_v0, %s428_s3  ;;  %v142_v0 = vmul.f32 %v541_v4, %v643_v48 }
  0x72   :  { %131 = vrot.lane.b32.xlu1 %v541_v4, %s428_s3  ;;  %129 = vrot.lane.b32.xlu0 %v543_v5, %s428_s3 }
  0x76   :  { %135 = vrot.lane.b32.xlu1 %v547_v6, %s428_s3  ;;  %133 = vrot.lane.b32.xlu0 %v549_v7, %s428_s3 }
  0x7a   :  { %212 = vrot.lane.b32.xlu1 %v553_v8, %s428_s3  ;;  %210 = vrot.lane.b32.xlu0 %v555_v9, %s428_s3 }
  0x7e   :  { %216 = vrot.lane.b32.xlu1 %v559_v10, %s428_s3  ;;  %214 = vrot.lane.b32.xlu0 %v561_v11, %s428_s3 }
  0x82   :  { %220 = vrot.lane.b32.xlu1 %v565_v12, %s428_s3  ;;  %218 = vrot.lane.b32.xlu0 %v567_v13, %s428_s3 }
  0x86   :  { %224 = vrot.lane.b32.xlu1 %v571_v14, %s428_s3  ;;  %222 = vrot.lane.b32.xlu0 %v573_v15, %s428_s3 }
  0xbc   :  { %v110_v16 = vpop.permute.xlu1 %109  ;;  %v106_v17 = vpop.permute.xlu0 %105 }
  0xbd   :  { %v145_v35 = vmul.f32 %v106_v17, %v611_v31  ;;  %v147_v49 = vmul.f32 %v110_v16, %v630_v41 }
  0xbf   :  { %v153_v50 = vadd.f32 %v145_v35, %v137_v34  ;;  %v155_v34 = vadd.f32 %v147_v49, %v139_v46 }
  0xc0   :  { %v112_v18 = vpop.permute.xlu1 %111  ;;  %v108_v19 = vpop.permute.xlu0 %107 }
  0xc1   :  { %v146_v42 = vmul.f32 %v108_v19, %v615_v33  ;;  %v148_v54 = vmul.f32 %v112_v18, %v633_v43  ;;  %v665_v18 = vld [vmem:[#allocation5 + $0x38] sm:$0xff]  ;;  %v667_v19 = vld [vmem:[#allocation5 + $0x30] sm:$0xff] }
  0xc2   :  { %v144_v46 = vmul.f32 %v547_v6, %v665_v18  ;;  %v689_v6 = vld [vmem:[#allocation8 + $0x38] sm:$0xff] }
  0xc3   :  { %v154_v55 = vadd.f32 %v146_v42, %v138_v40  ;;  %v156_v35 = vadd.f32 %v148_v54, %v140_v47  ;;  %v669_v40 = vld [vmem:[#allocation7 + $0x38] sm:$0xff]  ;;  %v673_v42 = vld [vmem:[#allocation7 + $0x30] sm:$0xff]  ;;  %v143_v47 = vmul.f32 %v549_v7, %v667_v19 }
  0xc4   :  { %v116_v20 = vpop.permute.xlu1 %115  ;;  %v114_v21 = vpop.permute.xlu0 %113 }
  0xc5   :  { %v150_v2 = vmul.f32 %v116_v20, %v649_v56  ;;  %v149_v3 = vmul.f32 %v114_v21, %v651_v57  ;;  %v675_v20 = vld [vmem:[#allocation8 + $0x28] sm:$0xff]  ;;  %v677_v21 = vld [vmem:[#allocation8 + $0x20] sm:$0xff] }
  0xc7   :  { %v158_v49 = vadd.f32 %v150_v2, %v142_v0 }
  0xc8   :  { %v593_v22 = vpop.permute.xlu1 %119  ;;  %v595_v23 = vpop.permute.xlu0 %117 }
  0xcc   :  { %v597_v24 = vpop.permute.xlu1 %196  ;;  %v599_v25 = vpop.permute.xlu0 %194 }
  0xcd   :  { %v234_v2 = vmul.f32 %v599_v25, %v611_v31 }
  0xd0   :  { %v601_v26 = vpop.permute.xlu1 %200  ;;  %v603_v27 = vpop.permute.xlu0 %198 }
  0xd4   :  { %v605_v28 = vpop.permute.xlu1 %204  ;;  %v607_v29 = vpop.permute.xlu0 %202 }
  0xd8   :  { %v620_v36 = vpop.permute.xlu1 %208  ;;  %v622_v37 = vpop.permute.xlu0 %206 }
  0xdc   :  { %v124_v51 = vpop.permute.xlu1 %123  ;;  %v122_v52 = vpop.permute.xlu0 %121 }
  0xdd   :  { %v162_v58 = vmul.f32 %v124_v51, %v635_v44  ;;  %v161_v59 = vmul.f32 %v122_v52, %v637_v45  ;;  %v157_v52 = vadd.f32 %v149_v3, %v141_v1  ;;  %v227_v1 = vmul.f32 %v553_v8, %v613_v32 }
  0xdf   :  { %v170_v62 = vadd.f32 %v162_v58, %v154_v55  ;;  %v169_v63 = vadd.f32 %v161_v59, %v153_v50  ;;  %v152_v58 = vmul.f32 %v593_v22, %v669_v40  ;;  %v151_v59 = vmul.f32 %v595_v23, %v673_v42 }
  0xe0   :  { %v128_v16 = vpop.permute.xlu1 %127  ;;  %v126_v17 = vpop.permute.xlu0 %125  ;;  %v226_v22 = vmul.f32 %v555_v9, %v609_v30  ;;  %v235_v23 = vmul.f32 %v597_v24, %v615_v33  ;;  %v229_v9 = vmul.f32 %v559_v10, %v626_v39  ;;  %v228_v24 = vmul.f32 %v561_v11, %v624_v38 }
  0xe1   :  { %178 = vst [vmem:[#allocation10 + $0x8] sm:$0xff] %v170_v62  ;;  %177 = vst [vmem:[#allocation10] sm:$0xff] %v169_v63  ;;  %v164_v4 = vmul.f32 %v128_v16, %v655_v60  ;;  %v163_v5 = vmul.f32 %v126_v17, %v657_v61  ;;  %v691_v16 = vld [vmem:[#allocation8 + $0x30] sm:$0xff]  ;;  %v231_v11 = vmul.f32 %v565_v12, %v643_v48 }
  0xe2   :  { %v243_v30 = vadd.f32 %v235_v23, %v227_v1  ;;  %v242_v25 = vadd.f32 %v234_v2, %v226_v22  ;;  %v230_v38 = vmul.f32 %v567_v13, %v646_v53  ;;  %v233_v13 = vmul.f32 %v571_v14, %v665_v18 }
  0xe3   :  { %v172_v50 = vadd.f32 %v164_v4, %v156_v35  ;;  %v171_v51 = vadd.f32 %v163_v5, %v155_v34  ;;  %v160_v34 = vadd.f32 %v152_v58, %v144_v46  ;;  %v159_v35 = vadd.f32 %v151_v59, %v143_v47 }
  0xe4   :  { %v132_v54 = vpop.permute.xlu1 %131  ;;  %v130_v55 = vpop.permute.xlu0 %129 }
  0xe5   :  { %180 = vst [vmem:[#allocation10 + $0x18] sm:$0xff] %v172_v50  ;;  %179 = vst [vmem:[#allocation10 + $0x10] sm:$0xff] %v171_v51  ;;  %v166_v62 = vmul.f32 %v132_v54, %v675_v20  ;;  %v165_v63 = vmul.f32 %v130_v55, %v677_v21  ;;  %v237_v50 = vmul.f32 %v601_v26, %v633_v43 }
  0xe6   :  { %v236_v51 = vmul.f32 %v603_v27, %v630_v41  ;;  %v239_v26 = vmul.f32 %v605_v28, %v649_v56  ;;  %v238_v27 = vmul.f32 %v607_v29, %v651_v57  ;;  %v232_v28 = vmul.f32 %v573_v15, %v667_v19 }
  0xe7   :  { %v174_v7 = vadd.f32 %v166_v62, %v158_v49  ;;  %v173_v0 = vadd.f32 %v165_v63, %v157_v52  ;;  %v245_v49 = vadd.f32 %v237_v50, %v229_v9  ;;  %v241_v54 = vmul.f32 %v620_v36, %v669_v40 }
  0xe8   :  { %v136_v3 = vpop.permute.xlu1 %135  ;;  %v134_v17 = vpop.permute.xlu0 %133  ;;  %v247_v53 = vadd.f32 %v239_v26, %v231_v11  ;;  %v246_v29 = vadd.f32 %v238_v27, %v230_v38 }
  0xe9   :  { %182 = vst [vmem:[#allocation10 + $0x28] sm:$0xff] %v174_v7  ;;  %181 = vst [vmem:[#allocation10 + $0x20] sm:$0xff] %v173_v0  ;;  %v168_v4 = vmul.f32 %v136_v3, %v689_v6  ;;  %v167_v5 = vmul.f32 %v134_v17, %v691_v16  ;;  %v249_v19 = vadd.f32 %v241_v54, %v233_v13 }
  0xeb   :  { %v176_v8 = vadd.f32 %v168_v4, %v160_v34  ;;  %v175_v32 = vadd.f32 %v167_v5, %v159_v35 }
  0xec   :  { %v213_v31 = vpop.permute.xlu1 %212  ;;  %v211_v33 = vpop.permute.xlu0 %210 }
  0xed   :  { %184 = vst [vmem:[#allocation10 + $0x38] sm:$0xff] %v176_v8  ;;  %183 = vst [vmem:[#allocation10 + $0x30] sm:$0xff] %v175_v32  ;;  %v251_v46 = vmul.f32 %v213_v31, %v635_v44  ;;  %v250_v47 = vmul.f32 %v211_v33, %v637_v45  ;;  %v244_v44 = vadd.f32 %v236_v51, %v228_v24 }
  0xef   :  { %v259_v10 = vadd.f32 %v251_v46, %v243_v30  ;;  %v258_v39 = vadd.f32 %v250_v47, %v242_v25 }
  0xf0   :  { %v217_v41 = vpop.permute.xlu1 %216  ;;  %v215_v43 = vpop.permute.xlu0 %214 }
  0xf1   :  { %268 = vst [vmem:[#allocation10 + $0x48] sm:$0xff] %v259_v10  ;;  %267 = vst [vmem:[#allocation10 + $0x40] sm:$0xff] %v258_v39  ;;  %v253_v45 = vmul.f32 %v217_v41, %v655_v60  ;;  %v252_v52 = vmul.f32 %v215_v43, %v657_v61  ;;  %v240_v60 = vmul.f32 %v622_v37, %v673_v42 }
  0xf3   :  { %v261_v12 = vadd.f32 %v253_v45, %v245_v49  ;;  %v260_v48 = vadd.f32 %v252_v52, %v244_v44  ;;  %v248_v59 = vadd.f32 %v240_v60, %v232_v28 }
  0xf4   :  { %v221_v56 = vpop.permute.xlu1 %220  ;;  %v219_v57 = vpop.permute.xlu0 %218 }
  0xf5   :  { %270 = vst [vmem:[#allocation10 + $0x58] sm:$0xff] %v261_v12  ;;  %269 = vst [vmem:[#allocation10 + $0x50] sm:$0xff] %v260_v48  ;;  %v255_v61 = vmul.f32 %v221_v56, %v675_v20  ;;  %v254_v55 = vmul.f32 %v219_v57, %v677_v21 }
  0xf7   :  { %v263_v14 = vadd.f32 %v255_v61, %v247_v53  ;;  %v262_v18 = vadd.f32 %v254_v55, %v246_v29 }
  0xf8   :  { %v225_v58 = vpop.permute.xlu1 %224  ;;  %v223_v15 = vpop.permute.xlu0 %222 }
  0xf9   :  { %272 = vst [vmem:[#allocation10 + $0x68] sm:$0xff] %v263_v14  ;;  %271 = vst [vmem:[#allocation10 + $0x60] sm:$0xff] %v262_v18  ;;  %v257_v36 = vmul.f32 %v225_v58, %v689_v6  ;;  %v256_v37 = vmul.f32 %v223_v15, %v691_v16 }
  0xfb   :  { %v265_v40 = vadd.f32 %v257_v36, %v249_v19  ;;  %v264_v42 = vadd.f32 %v256_v37, %v248_v59 }
  0xfd   :  { %274 = vst [vmem:[#allocation10 + $0x78] sm:$0xff] %v265_v40  ;;  %273 = vst [vmem:[#allocation10 + $0x70] sm:$0xff] %v264_v42 }
  0xfe   :  { %402 = shalt.err (!%p399_p8)
}
  0xff   :  { %s403_s17 = scalar_lea.hbm %s754_s4, 2048 }
 0x100   :  { %p404_p9 = scmp.ne.s32.totalorder %s754_s4, %s403_s17  ;;  %p407_p10 = scmp.lt.u32.totalorder %s403_s17, %s754_s4 }
 0x102   :  { %p409_p11 = pnand %p407_p10, %p404_p9 }
 0x104   :  { %412 = shalt.err (!%p409_p11)
}
 0x105   :  { %286 = dma.vmem_to_hbm [thread:$0]  %s281_s13, 2048, %s754_s4, [#allocation4], %s423_s27, %s423_s27, %s424_s28  }
 0x106   :  { %419 = dma.done.wait [#allocation4], 2048  }
 0x107   :  { %420 = vsyncadd [#allocation4], 4294965248 }
 0x108   :  { %290 = vsyncpa [#allocation3], 1 }
 0x109   :  { %291 = vsyncpa [#allocation6], 1 }
 0x10a   :  { %292 = vsyncpa [#allocation9], 1 }
 0x10b   :  { %293 = vsyncpa [#allocation4], 1 }

</bundles_post_ra>
